<compile_context>
chip_gen: v6e
topology: v6e:2x2x1
jax: 0.10.0
libtpu: 0.0.40
codegen_flags: <defaults>
</compile_context>

<pallas_src>
import functools
import numpy as np
import jax
import jax.numpy as jnp
from jax.experimental import pallas as pl
from jax.experimental.pallas import tpu as pltpu

SZ = 7                          # board size
SS = SZ * SZ                    # 49 spatial positions per board
NTAPS = 25                      # all taps of a 5x5 window; 3x3 convs use a subset
NGRP = 5                        # tap groups for the K-split conv GEMM
GRP = NTAPS // NGRP             # 5 taps per group
OFFS = [(dy, dx) for dy in range(-2, 3) for dx in range(-2, 3)]
CENTER = OFFS.index((0, 0))
NPOL = 17 * SS                  # 833 policy logits
CIN = 16                        # trunk channel width (stem input zero-padded 3 -> 16)
MXU_DT = jnp.bfloat16           # conv MXU operand dtype (accumulation stays f32)


# --------------------------------------------------------------------------- helpers
@functools.lru_cache(maxsize=None)
def _roll_sign():
    """Probe pltpu.roll's rotation convention once: returns s such that
    pltpu.roll(x, (s*d) % n, axis)[..., p] == x[..., p + d]."""
    def k(x_ref, o_ref):
        o_ref[...] = pltpu.roll(x_ref[...], 1, 1)
    x = jnp.tile(jnp.arange(128, dtype=jnp.float32)[None, :], (8, 1))
    out = pl.pallas_call(k, out_shape=jax.ShapeDtypeStruct((8, 128), jnp.float32))(x)
    # np.roll convention -> out[0,1] == x[0,0] == 0  -> to read x[p+d] use shift -d.
    return -1 if float(out[0, 1]) < 0.5 else 1


@functools.lru_cache(maxsize=None)
def _build_masks(nb):
    """(25, Ppad) tap masks: masks[k, p] = 1 iff p < nb*49 and shifting position p
    by tap k stays on the same 7x7 board (zero padding)."""
    p_valid = nb * SS
    p_pad = ((p_valid + 127) // 128) * 128
    m = np.zeros((NTAPS, p_pad), np.float32)
    for k, (dy, dx) in enumerate(OFFS):
        for y in range(SZ):
            for x in range(SZ):
                if 0 <= y + dy < SZ and 0 <= x + dx < SZ:
                    m[k, [n * SS + y * SZ + x for n in range(nb)]] = 1.0
    return m, p_valid, p_pad


@functools.lru_cache(maxsize=None)
def _masks_device(nb):
    """Cached device-side bf16 masks (0/1 exact in bf16)."""
    m, p_valid, p_pad = _build_masks(nb)
    return jnp.asarray(m, MXU_DT), p_valid, p_pad


def _pack_conv(convs, cin):
    """Pack [(w (co,ci,k,k), ksize), ...] into (sum_co, 25*cin), tap-major K.
    Output-channel order = list order (matches torch.cat along dim=1)."""
    cout = sum(int(np.asarray(w).shape[0]) for w, _ in convs)
    out = np.zeros((cout, NTAPS * cin), np.float32)
    for k, (dy, dx) in enumerate(OFFS):
        row = 0
        for w, ks in convs:
            w = np.asarray(w)
            co, ci, pad = w.shape[0], w.shape[1], ks // 2
            ky, kx = dy + pad, dx + pad
            if 0 <= ky < ks and 0 <= kx < ks:
                out[row:row + co, k * cin:k * cin + ci] = w[:, :, ky, kx]
            row += co
    return out


def _group_taps(w):
    """(co, 25*cin) -> (5, co, 5*cin): tap-group-major, so the conv GEMM can be
    K-split into 5 accumulated dots that interleave with the im2col stores."""
    co = w.shape[0]
    return np.transpose(w.reshape(co, NGRP, GRP * CIN), (1, 0, 2))


def pack_params(params):
    """One-time host-side packing of weights into the kernel layout (cache & reuse)."""
    packs = []
    for b in params["blocks"]:
        packs.append(_pack_conv([(b["c1a"], 3), (b["c1b"], 5)], CIN))
        packs.append(_pack_conv([(b["c2a"], 3), (b["c2b"], 5)], CIN))
    w_res = np.stack([_group_taps(p) for p in packs])                  # (12, 5, 16, 80)
    # Stem columns: [conv1a(8) | conv1b(4) | conv1b(4)] -- conv1b used twice.
    w_stem = _group_taps(_pack_conv([(params["conv1a"], 3), (params["conv1b"], 5),
                                     (params["conv1b"], 5)], CIN))     # (5, 16, 80)

    bn_g = np.stack([np.asarray(params["bn1_g"])] +
                    [np.asarray(b[k]) for b in params["blocks"]
                     for k in ("bn1_g", "bn2_g")], axis=1)             # (16, 13)
    bn_b = np.stack([np.asarray(params["bn1_b"])] +
                    [np.asarray(b[k]) for b in params["blocks"]
                     for k in ("bn1_b", "bn2_b")], axis=1)

    w_hconv = np.concatenate([np.asarray(params["conv_val"])[:, :, 0, 0],
                              np.asarray(params["conv_pol"])[:, :, 0, 0]], 0)  # (4,16)
    bnh_g = np.concatenate([np.asarray(params["bnv_g"]),
                            np.asarray(params["bnp_g"])]).reshape(4, 1)
    bnh_b = np.concatenate([np.asarray(params["bnv_b"]),
                            np.asarray(params["bnp_b"])]).reshape(4, 1)
    w_polt = np.asarray(params["fc_pol_w"]).T                          # (147, 833)

    f32 = jnp.float32
    return dict(
        w_stem=jnp.asarray(w_stem, MXU_DT),
        w_res=jnp.asarray(w_res, MXU_DT),
        bn_g=jnp.asarray(bn_g, f32), bn_b=jnp.asarray(bn_b, f32),
        w_hconv=jnp.asarray(w_hconv, f32),
        bnh_g=jnp.asarray(bnh_g, f32), bnh_b=jnp.asarray(bnh_b, f32),
        w_fc1t=jnp.asarray(np.asarray(params["fc_val1_w"]).T, f32),    # (49, 49)
        b_fc1=jnp.asarray(np.asarray(params["fc_val1_b"]).reshape(1, SS), f32),
        w_fc2t=jnp.asarray(np.asarray(params["fc_val2_w"]).T, f32),    # (49, 1)
        b_fc2=jnp.asarray(np.asarray(params["fc_val2_b"]).reshape(1, 1), f32),
        w_polt=jnp.asarray(w_polt, f32),
        b_pol=jnp.asarray(np.asarray(params["fc_pol_b"]).reshape(1, NPOL), f32),
    )


def init_params(key):
    ks = iter(jax.random.split(key, 80))

    def w(shape, scale=0.1):
        return scale * jax.random.normal(next(ks), shape, jnp.float32)

    p = {
        "conv1a": w((8, 3, 3, 3)),
        "conv1b": w((4, 3, 5, 5)),
        # conv1c (4,3,7,7) exists in __init__ but forward() never uses it.
        "bn1_g": 1.0 + w((16,), 0.05), "bn1_b": w((16,), 0.05),
        "blocks": [],
        "conv_val": w((1, 16, 1, 1)),
        "bnv_g": 1.0 + w((1,), 0.05), "bnv_b": w((1,), 0.05),
        "fc_val1_w": w((SS, SS)), "fc_val1_b": w((SS,)),
        "fc_val2_w": w((1, SS)), "fc_val2_b": w((1,)),
        "conv_pol": w((3, 16, 1, 1)),
        "bnp_g": 1.0 + w((3,), 0.05), "bnp_b": w((3,), 0.05),
        "fc_pol_w": w((NPOL, 3 * SS)), "fc_pol_b": w((NPOL,)),
    }
    for _ in range(6):
        p["blocks"].append(dict(
            c1a=w((8, 16, 3, 3)), c1b=w((8, 16, 5, 5)),
            bn1_g=1.0 + w((16,), 0.05), bn1_b=w((16,), 0.05),
            c2a=w((8, 16, 3, 3)), c2b=w((8, 16, 5, 5)),
            bn2_g=1.0 + w((16,), 0.05), bn2_b=w((16,), 0.05)))
    return p


def _vmem_limit_bytes(args, nb, p_pad):
    """Explicit scoped-VMEM request derived from the actual footprint (inputs are
    double-buffered by BlockSpec) with generous headroom.
    NOTE: v7x physical VMEM is 64 MiB (half of v5e/v6e); very large untiled batches
    need the lane-tiled grid (see TODO in sidus_forward), not a bigger limit."""
    arg_bytes = sum(int(np.prod(a.shape)) * a.dtype.itemsize for a in args)
    out_bytes = nb * (NPOL + 1) * 4
    patch = NTAPS * CIN * p_pad * 2                 # bf16 im2col scratch
    work = 10 * CIN * p_pad * 4                     # live f32 trunk activations
    est = 2 * (arg_bytes + out_bytes) + patch + work + (8 << 20)
    return int(min(128 << 20, max(32 << 20, est)))


# ------------------------------------------------------------------------ pallas fwd
def sidus_forward(batch, packed):
    nb = batch.reshape(-1, 3, SZ, SZ).shape[0]
    masks, p_valid, p_pad = _masks_device(nb)
    sign = _roll_sign()
    inv_cnt = 1.0 / float(p_valid)

    # NCHW -> (C, N*H*W): channels on sublanes, flattened spatial on lanes.
    x = jnp.transpose(batch.reshape(nb, 3, SZ, SZ), (1, 0, 2, 3)).reshape(3, nb * SS)
    x = jnp.pad(x, ((0, CIN - 3), (0, p_pad - p_valid)))               # (16, Ppad)

    def kernel(x_ref, masks_ref, w_stem_ref, w_res_ref, bn_g_ref, bn_b_ref,
               w_hconv_ref, bnh_g_ref, bnh_b_ref, w_fc1_ref, b_fc1_ref,
               w_fc2_ref, b_fc2_ref, w_pol_ref, b_pol_ref,
               pol_ref, val_ref, patch_ref):
        f32 = jnp.float32
        relu = lambda t: jnp.maximum(t, 0.0)
        mskb = masks_ref[...]                                          # (25, Ppad) bf16
        bng = bn_g_ref[...]                                            # (16, 13)
        bnb = bn_b_ref[...]

        def conv(h, w):
            # im2col done fully in bf16: cast once, then 25 masked lane-rolls into
            # the bf16 patch scratch.  The GEMM is K-split into 5 accumulated
            # (16,80)@(80,Ppad) dots (one per 5-tap group) so MXU pushes overlap the
            # next group's rolls/stores.  w: (5, 16, 80) bf16.
            hb = h.astype(MXU_DT)
            acc = None
            for g in range(NGRP):
                for j in range(GRP):
                    k = g * GRP + j
                    dy, dx = OFFS[k]
                    d = dy * SZ + dx
                    src = hb if d == 0 else pltpu.roll(hb, (sign * d) % p_pad, axis=1)
                    patch_ref[k * CIN:(k + 1) * CIN, :] = src * mskb[k:k + 1, :]
                part = jnp.dot(w[g],
                               patch_ref[g * GRP * CIN:(g + 1) * GRP * CIN, :],
                               preferred_element_type=f32)             # (16, Ppad)
                acc = part if acc is None else acc + part
            return acc

        def bnorm(h, g, b):
            # training-mode batch stats over the true N*H*W count (conv outputs are
            # exactly 0 on padded lanes); affine folded into one scale/shift pass.
            mean = jnp.sum(h, axis=1, keepdims=True) * inv_cnt
            var = jnp.sum(h * h, axis=1, keepdims=True) * inv_cnt - mean * mean
            scale = g * jax.lax.rsqrt(var + 1e-5)
            shift = b - mean * scale
            return h * scale + shift

        # ---- stem: cat(relu(conv1a), relu(conv1b), relu(conv1b)) -> bn1 -> relu
        x16 = relu(conv(x_ref[...], w_stem_ref[...]))
        x16 = relu(bnorm(x16, bng[:, 0:1], bnb[:, 0:1]))

        # ---- 6 residual blocks
        for blk in range(6):
            l1, l2 = 1 + 2 * blk, 2 + 2 * blk
            h = conv(x16, w_res_ref[2 * blk])
            h = relu(bnorm(h, bng[:, l1:l1 + 1], bnb[:, l1:l1 + 1]))
            h = conv(h, w_res_ref[2 * blk + 1])
            h = bnorm(h, bng[:, l2:l2 + 1], bnb[:, l2:l2 + 1])
            x16 = relu(h + x16)

        # ---- 1x1 head convs (row 0 = value, rows 1:4 = policy) + BN + relu
        valid = mskb[CENTER:CENTER + 1, :].astype(f32)  # 1 iff lane < N*49
        hv = jnp.dot(w_hconv_ref[...], x16 * valid, preferred_element_type=f32)
        hv = relu(bnorm(hv, bnh_g_ref[...], bnh_b_ref[...]))           # (4, Ppad)

        def rows(r):                                    # gather head row r board-major
            # TODO(synk): at large batch, switch to a 64-lane-per-board layout so this
            # becomes an aligned retile instead of nb unrolled 49-wide lane slices.
            return jnp.concatenate(
                [hv[r:r + 1, n * SS:(n + 1) * SS] for n in range(nb)], axis=0)

        # value head: fc(49->49) -> relu -> fc(49->1) -> tanh   (batched over boards)
        h1 = relu(jnp.dot(rows(0), w_fc1_ref[...], preferred_element_type=f32)
                  + b_fc1_ref[...])
        val_ref[...] = jnp.tanh(
            jnp.dot(h1, w_fc2_ref[...], preferred_element_type=f32) + b_fc2_ref[...])

        # policy head: ONE fused fc (nb,147)@(147,833) + bias, log_softmax over lanes,
        # emitted lane-dense as (nb, 833).
        pflat = jnp.concatenate([rows(1), rows(2), rows(3)], axis=1)   # (nb, 147)
        logits = (jnp.dot(pflat, w_pol_ref[...], preferred_element_type=f32)
                  + b_pol_ref[...])
        z = logits - jnp.max(logits, axis=1, keepdims=True)
        pol_ref[...] = z - jnp.log(jnp.sum(jnp.exp(z), axis=1, keepdims=True))

    args = (x, masks, packed["w_stem"], packed["w_res"], packed["bn_g"],
            packed["bn_b"], packed["w_hconv"], packed["bnh_g"], packed["bnh_b"],
            packed["w_fc1t"], packed["b_fc1"], packed["w_fc2t"], packed["b_fc2"],
            packed["w_polt"], packed["b_pol"])
    pol, val = pl.pallas_call(
        kernel,
        out_shape=(jax.ShapeDtypeStruct((nb, NPOL), jnp.float32),
                   jax.ShapeDtypeStruct((nb, 1), jnp.float32)),
        grid=(1,),
        in_specs=[pl.BlockSpec(a.shape, lambda i, nd=a.ndim: (0,) * nd) for a in args],
        out_specs=(pl.BlockSpec((nb, NPOL), lambda i: (0, 0)),
                   pl.BlockSpec((nb, 1), lambda i: (0, 0))),
        scratch_shapes=[pltpu.VMEM((NTAPS * CIN, p_pad), MXU_DT)],
        compiler_params=pltpu.CompilerParams(
            dimension_semantics=("arbitrary",),
            vmem_limit_bytes=_vmem_limit_bytes(args, nb, p_pad)),
    )(*args)
    # TODO(synk): for large batches, tile the lane (batch*49) axis as a real grid
    # dimension with per-tile BatchNorm partial sum/sumsq accumulators and a
    # cross-tile combine, mark it "parallel" so v7x's second TensorCore is used and
    # the untiled VMEM ceiling (64 MiB on v7x) goes away.
    return pol, val                                 # (N, 833) log-probs, (N, 1) value


# ----------------------------------------------------------------- pure-JAX reference
def ref_forward(batch, params):
    HI = jax.lax.Precision.HIGHEST

    def conv2d(xx, w, pad):
        return jax.lax.conv_general_dilated(
            xx, w, (1, 1), [(pad, pad), (pad, pad)],
            dimension_numbers=("NCHW", "OIHW", "NCHW"), precision=HI)

    def bn(xx, g, b):
        mean = jnp.mean(xx, axis=(0, 2, 3), keepdims=True)
        var = jnp.mean(xx * xx, axis=(0, 2, 3), keepdims=True) - mean * mean
        return ((xx - mean) * jax.lax.rsqrt(var + 1e-5)
                * g.reshape(1, -1, 1, 1) + b.reshape(1, -1, 1, 1))

    relu = lambda t: jnp.maximum(t, 0.0)
    x = batch.reshape(-1, 3, SZ, SZ)
    xa = relu(conv2d(x, params["conv1a"], 1))
    xb = relu(conv2d(x, params["conv1b"], 2))
    x = jnp.concatenate([xa, xb, xb], axis=1)               # conv1b used twice
    x = relu(bn(x, params["bn1_g"], params["bn1_b"]))
    for b in params["blocks"]:
        h = jnp.concatenate([conv2d(x, b["c1a"], 1), conv2d(x, b["c1b"], 2)], axis=1)
        h = relu(bn(h, b["bn1_g"], b["bn1_b"]))
        h = jnp.concatenate([conv2d(h, b["c2a"], 1), conv2d(h, b["c2b"], 2)], axis=1)
        h = bn(h, b["bn2_g"], b["bn2_b"])
        x = relu(h + x)
    v = relu(bn(conv2d(x, params["conv_val"], 0), params["bnv_g"], params["bnv_b"]))
    v = v.reshape(-1, SS)
    v = relu(jnp.dot(v, params["fc_val1_w"].T, precision=HI) + params["fc_val1_b"])
    v = jnp.tanh(jnp.dot(v, params["fc_val2_w"].T, precision=HI) + params["fc_val2_b"])
    p = relu(bn(conv2d(x, params["conv_pol"], 0), params["bnp_g"], params["bnp_b"]))
    p = p.reshape(-1, 3 * SS)
    p = jnp.dot(p, params["fc_pol_w"].T, precision=HI) + params["fc_pol_b"]
    return jax.nn.log_softmax(p, axis=1), v


if __name__ == "__main__":
    key = jax.random.PRNGKey(0)
    pkey, xkey = jax.random.split(key)
    params = init_params(pkey)
    batch = jax.random.normal(xkey, (2, 3, SZ, SZ), jnp.float32)   # NCHW, like PyTorch

    packed = pack_params(params)            # host-side packing, done once and reused
    logp, value = sidus_forward(batch, packed)
    jax.block_until_ready((logp, value))

    assert logp.shape == (2, NPOL) and value.shape == (2, 1)

    logp_ref, value_ref = ref_forward(batch, params)
    pol_err = float(jnp.max(jnp.abs(logp - logp_ref)))
    val_err = float(jnp.max(jnp.abs(value - value_ref)))
    assert pol_err < 1e-1, f"policy mismatch: {pol_err}"
    assert val_err < 5e-2, f"value mismatch: {val_err}"

    print("KERNEL_OK")
</pallas_src>

<mosaic_0001>
module attributes {stable_mosaic.version = 11 : i64} {
  func.func @k(%arg0: memref<8x128xf32, #tpu.memory_space<vmem>>, %arg1: memref<8x128xf32, #tpu.memory_space<vmem>>) attributes {dimension_semantics = [], scalar_prefetch = 0 : i64, scratch_operands = 0 : i64, tpu.core_type = #tpu.core_type<tc>} {
    %c0 = arith.constant 0 : index
    %c0_0 = arith.constant 0 : index
    %0 = vector.load %arg0[%c0, %c0_0] : memref<8x128xf32, #tpu.memory_space<vmem>>, vector<8x128xf32>
    %c1_i32 = arith.constant 1 : i32
    %1 = tpu.dynamic_rotate %0 by %c1_i32 dim 1 : vector<8x128xf32>, i32 -> vector<8x128xf32>
    %c0_1 = arith.constant 0 : index
    %c0_2 = arith.constant 0 : index
    %2 = vector.load %arg1[%c0_1, %c0_2] : memref<8x128xf32, #tpu.memory_space<vmem>>, vector<8x128xf32>
    tpu.vector_store %arg1[%c0_1, %c0_2], %1 {strides = array<i32>} : memref<8x128xf32, #tpu.memory_space<vmem>>, vector<8x128xf32>,
    return
  }
}

</mosaic_0001>

<bundles_post_ra>
// kernel: tpu_custom_call.1
= control target key start
LH: loop header
LB: loop body
LE: loop exit
PB: predicated region body
PF: predicated region fallthrough
CT: control target
= control target key end

     0   :  { %6 = vsyncpa [#allocation3], 0  ;;  %s106_s0 = inlined_call_operand.hbm [shape: f32[8,128], index: 0, kind: input, shape index: {}]   ;;  %s107_s1 = inlined_call_operand.hbm [shape: f32[8,128], index: 1, kind: output, shape index: {}]  }
   0x1   :  { %7 = vsyncpa [#allocation4], 0  ;;  %s87_s6 = smov [#allocation2]  }
   0x2   :  { %s14_s7 = sshll.u32 %s87_s6, 4  ;;  %s15_s7 = int_to_ptr.vmem [resolvable:$true] %s14_s7 }
   0x3   :  { %s51_s8 = scalar_lea.vmem %s15_s7, 128  ;;  %p56_p1 = scmp.lt.s32.totalorder %s15_s7, %s15_s7 }
   0x4   :  { %p52_p0 = scmp.ne.s32.totalorder %s15_s7, %s51_s8  ;;  %p57_p2 = scmp.lt.s32.totalorder %s51_s8, %s51_s8 }
   0x6   :  { %p58_p3 = por %p57_p2, %p56_p1 }
   0x8   :  { %p59_p4 = pnand %p58_p3, %p52_p0 }
   0xa   :  { %62 = shalt.err (!%p59_p4)
}
   0xb   :  { %17 = dma.hbm_to_vmem [thread:$0]  %s106_s0, 128, %s15_s7, [#allocation3]  }
   0xc   :  { %83 = dma.done.wait [#allocation3], 128  }
   0xd   :  { %84 = vsyncadd [#allocation3], 4294967168  ;;  %v21_v0 = vld [vmem:[#allocation2] sm:$0xff]  ;;  %s88_s11 = smov 1   ;;  %s89_s12 = smov [#allocation5]  }
   0xe   :  { %22 = vrot.lane.b32.xlu0 %v21_v0, %s88_s11  ;;  %s31_s13 = sshll.u32 %s89_s12, 4  ;;  %s32_s13 = int_to_ptr.vmem [resolvable:$true] %s31_s13 }
   0xf   :  { %s63_s14 = scalar_lea.vmem %s32_s13, 128  ;;  %p68_p6 = scmp.lt.s32.totalorder %s32_s13, %s32_s13 }
  0x10   :  { %p64_p5 = scmp.ne.s32.totalorder %s32_s13, %s63_s14  ;;  %p69_p7 = scmp.lt.s32.totalorder %s63_s14, %s63_s14 }
  0x12   :  { %p70_p8 = por %p69_p7, %p68_p6 }
  0x14   :  { %p71_p9 = pnand %p70_p8, %p64_p5 }
  0x80   :  { %v23_v1 = vpop.permute.xlu0 %22 }
  0x81   :  { %24 = vst [vmem:[#allocation5] sm:$0xff] %v23_v1 }
  0x82   :  { %74 = shalt.err (!%p71_p9)
}
  0x83   :  { %34 = dma.vmem_to_hbm [thread:$0]  %s32_s13, 128, %s107_s1, [#allocation4]  }
  0x84   :  { %85 = dma.done.wait [#allocation4], 128  }
  0x85   :  { %86 = vsyncadd [#allocation4], 4294967168 }
  0x86   :  { %38 = vsyncpa [#allocation3], 1 }
  0x87   :  { %39 = vsyncpa [#allocation4], 1 }

</bundles_post_ra>
